<compile_context>
chip_gen: v6e
topology: v6e:2x2x1
jax: 0.10.0
libtpu: 0.0.40
codegen_flags: <defaults>
</compile_context>

<pallas_src>
from functools import partial

import numpy as np
import jax
import jax.numpy as jnp
from jax.experimental import pallas as pl
from jax.experimental.pallas import tpu as pltpu


# ----------------------------------------------------------------------------
# Fused kernel: encoders + attention + critics + Q gather
# ----------------------------------------------------------------------------
def _attention_critic_kernel(x_ref, enc_w_ref, shared_w_ref, c_w1_ref, c_w2_ref,
                             bias_ref, q_ref, *, nagents, batch, attend_heads,
                             sdim, adim):
    f32 = jnp.float32
    A, B = nagents, batch
    H = shared_w_ref.shape[0]
    D = H // attend_heads
    scale = 1.0 / float(D) ** 0.5
    leaky = lambda v: jnp.where(v >= 0, v, 0.01 * v)    # LeakyReLU(0.01)
    blk = lambda i: slice(i * B, (i + 1) * B)           # agent i's row block

    x = x_ref[...]                    # (A*B, S+AD+1); last lane is the 1.0 bias lane
    shared_w = shared_w_ref[...]      # (H, 3H): [key_w | val_w | sel_w]
    val_b = bias_ref[0:1, :]          # (1, H)

    # ---- per-agent encoders (BN folded into weights; bias via ones lane) ----
    # x_i @ enc_w[i] -> [sa_enc | s_enc], then one LeakyReLU over both halves.
    # TODO(synk): training-mode BatchNorm (batch statistics) is not implemented;
    # eval-mode running statistics are folded into the weights.
    sa_blocks, s_blocks = [], []
    for i in range(A):
        enc = leaky(jnp.dot(x[blk(i)], enc_w_ref[i],
                            preferred_element_type=f32))          # (B, 2H)
        sa_blocks.append(enc[:, :H])
        s_blocks.append(enc[:, H:])
    sa_enc = jnp.concatenate(sa_blocks, axis=0)                    # (A*B, H)
    s_enc = jnp.concatenate(s_blocks, axis=0)                      # (A*B, H)

    # ---- shared extractors: one fused key|val matmul, one sel matmul ----
    kv = jnp.dot(sa_enc, shared_w[:, :2 * H], preferred_element_type=f32)  # (A*B, 2H)
    keys = kv[:, :H]
    vals = leaky(kv[:, H:] + val_b)
    sels = jnp.dot(s_enc, shared_w[:, 2 * H:], preferred_element_type=f32)  # (A*B, H)

    # hoisted: JAX does not CSE broadcast_in_dim, so build the iota once
    lane = jax.lax.broadcasted_iota(jnp.int32, (B, adim), 1)

    def head_bcast(w):                 # (B, heads) -> (B, H) head-lane broadcast
        if attend_heads == 1:
            return w                   # (B, 1) broadcasts against (B, H)
        return jnp.broadcast_to(w[:, :, None], (B, attend_heads, D)).reshape(B, H)

    # ---- per-agent attention over the OTHER agents + critic + Q gather ----
    q_rows = []
    for i in range(A):
        sel_i = sels[blk(i)]                                       # (B, H)

        # scaled dot-product logits against every other agent (all heads at once)
        logits = []                                                # each (B, heads)
        for j in range(A):
            if j == i:
                continue
            prod = sel_i * keys[blk(j)]                            # (B, H)
            if attend_heads == 1:
                logits.append(scale * jnp.sum(prod, axis=-1, keepdims=True))
            else:
                logits.append(scale * jnp.sum(
                    prod.reshape(B, attend_heads, D), axis=-1))
        m = logits[0]
        for l in logits[1:]:
            m = jnp.maximum(m, l)
        exps = [jnp.exp(l - m) for l in logits]
        denom = exps[0]
        for e in exps[1:]:
            denom = denom + e
        inv = pl.reciprocal(denom, approx=True)                    # EUP slot

        # attention-weighted sum of the other agents' values (all heads, full width)
        attended = None
        t = 0
        for j in range(A):
            if j == i:
                continue
            contrib = head_bcast(exps[t]) * vals[blk(j)]           # (B, H)
            attended = contrib if attended is None else attended + contrib
            t += 1
        attended = attended * head_bcast(inv)                      # normalize once

        # ---- critic: split-weight layer 1 (no lane concat), then layer 2 ----
        w1 = c_w1_ref[i]                                           # (2H, H)
        h1 = (jnp.dot(s_enc[blk(i)], w1[:H, :], preferred_element_type=f32)
              + jnp.dot(attended, w1[H:, :], preferred_element_type=f32)
              + bias_ref[1 + i:2 + i, :])
        h1 = leaky(h1)                                             # (B, H)
        all_q = (jnp.dot(h1, c_w2_ref[i], preferred_element_type=f32)
                 + bias_ref[1 + A + i:2 + A + i, :adim])           # (B, AD)

        # q = all_q.gather(1, argmax(actions, dim=1))  (first index on ties)
        a_i = x[blk(i), sdim:sdim + adim]
        amax = jnp.max(a_i, axis=-1, keepdims=True)
        first = jnp.min(jnp.where(a_i == amax, lane, adim), axis=-1, keepdims=True)
        one_hot = jnp.where(lane == first, 1.0, 0.0).astype(f32)
        q_rows.append(jnp.sum(all_q * one_hot, axis=-1))           # (B,)

    # single lane-dense output store
    q_ref[...] = jnp.stack(q_rows, axis=0)                         # (A, B)


# ----------------------------------------------------------------------------
# Wrapper: BN folding + slab packing + pallas_call
# ----------------------------------------------------------------------------
def attention_critic_forward(states, actions, params, *, attend_heads=1):
    """states: (A, B, sdim), actions: (A, B, adim) one-hot.
    Returns list of per-agent Q tensors of shape (B, 1) (return_q=True path)."""
    A, B, S = states.shape
    AD = actions.shape[-1]
    H = params["key_w"].shape[0]
    idim = S + AD
    eps = 1e-5
    assert H >= AD and H % attend_heads == 0

    # ---- fold eval-mode BatchNorm into the encoder weights/biases (hoisted) ----
    sa_is = 1.0 / jnp.sqrt(params["bn_sa_var"] + eps)              # (A, 1, idim)
    s_is = 1.0 / jnp.sqrt(params["bn_s_var"] + eps)                # (A, 1, S)
    enc_w_f = params["enc_w"] * jnp.swapaxes(sa_is, 1, 2)          # (A, idim, H)
    enc_b_f = params["enc_b"] - jnp.matmul(params["bn_sa_mean"] * sa_is,
                                           params["enc_w"])        # (A, 1, H)
    senc_w_f = params["senc_w"] * jnp.swapaxes(s_is, 1, 2)         # (A, S, H)
    senc_b_f = params["senc_b"] - jnp.matmul(params["bn_s_mean"] * s_is,
                                             params["senc_w"])     # (A, 1, H)

    # ---- pack everything into a handful of lane-dense slabs ----
    # combined encoder: x_aug @ enc_comb[i] -> [sa_enc | s_enc]   (A, idim+1, 2H)
    senc_pad = jnp.concatenate(
        [senc_w_f, jnp.zeros((A, AD, H), jnp.float32)], axis=1)    # (A, idim, H)
    enc_comb = jnp.concatenate(
        [jnp.concatenate([enc_w_f, senc_pad], axis=2),             # weight rows
         jnp.concatenate([enc_b_f, senc_b_f], axis=2)], axis=1)    # bias row

    shared_w = jnp.concatenate(
        [params["key_w"], params["val_w"], params["sel_w"]], axis=1)   # (H, 3H)

    bias_slab = jnp.concatenate(
        [params["val_b"],                                          # row 0
         params["c_b1"].reshape(A, H),                             # rows 1..A
         jnp.pad(params["c_b2"].reshape(A, AD), ((0, 0), (0, H - AD)))],
        axis=0)                                                    # (2A+1, H)

    ones = jnp.ones((A, B, 1), jnp.float32)
    x = jnp.concatenate([states, actions, ones], axis=-1).reshape(A * B, idim + 1)

    vmem = pl.BlockSpec(memory_space=pltpu.MemorySpace.VMEM)
    # TODO(synk): add a ("parallel",) batch grid axis + vmem_limit_bytes when
    # batch is production-sized (sharding across v7x's 2 TensorCores); for tiny
    # B the per-step grid overhead would dominate, so stay gridless here.
    q = pl.pallas_call(
        partial(_attention_critic_kernel, nagents=A, batch=B,
                attend_heads=attend_heads, sdim=S, adim=AD),
        out_shape=jax.ShapeDtypeStruct((A, B), jnp.float32),
        in_specs=[vmem] * 6,
        out_specs=vmem,
    )(x, enc_comb, shared_w, params["c_w1"], params["c_w2"], bias_slab)

    return [q[i][:, None] for i in range(A)]


# ----------------------------------------------------------------------------
# Deterministic parameter init (PyTorch nn.Linear default U(-1/sqrt(fan_in), ·))
# ----------------------------------------------------------------------------
def init_params(key, nagents, sdim, adim, hidden_dim, attend_heads):
    assert hidden_dim % attend_heads == 0

    def unif(k, shape, fan_in):
        b = 1.0 / float(fan_in) ** 0.5
        return jax.random.uniform(k, shape, jnp.float32, -b, b)

    idim = sdim + adim
    ks = jax.random.split(key, 16)
    return {
        "enc_w": unif(ks[0], (nagents, idim, hidden_dim), idim),
        "enc_b": unif(ks[1], (nagents, 1, hidden_dim), idim),
        "senc_w": unif(ks[2], (nagents, sdim, hidden_dim), sdim),
        "senc_b": unif(ks[3], (nagents, 1, hidden_dim), sdim),
        # per-head extractors concatenated along the output dim (shared across agents)
        "key_w": unif(ks[4], (hidden_dim, hidden_dim), hidden_dim),   # bias=False
        "sel_w": unif(ks[5], (hidden_dim, hidden_dim), hidden_dim),   # bias=False
        "val_w": unif(ks[6], (hidden_dim, hidden_dim), hidden_dim),
        "val_b": unif(ks[7], (1, hidden_dim), hidden_dim),
        "c_w1": unif(ks[8], (nagents, 2 * hidden_dim, hidden_dim), 2 * hidden_dim),
        "c_b1": unif(ks[9], (nagents, 1, hidden_dim), 2 * hidden_dim),
        "c_w2": unif(ks[10], (nagents, hidden_dim, adim), hidden_dim),
        "c_b2": unif(ks[11], (nagents, 1, adim), hidden_dim),
        # non-trivial eval-mode BatchNorm running stats (affine=False) so the
        # weight-folding path is actually exercised by the correctness check
        "bn_sa_mean": 0.1 * jax.random.normal(ks[12], (nagents, 1, idim), jnp.float32),
        "bn_sa_var": jax.random.uniform(ks[13], (nagents, 1, idim), jnp.float32, 0.5, 1.5),
        "bn_s_mean": 0.1 * jax.random.normal(ks[14], (nagents, 1, sdim), jnp.float32),
        "bn_s_var": jax.random.uniform(ks[15], (nagents, 1, sdim), jnp.float32, 0.5, 1.5),
    }


# ----------------------------------------------------------------------------
# Pure-JAX reference (mirrors the PyTorch forward, default arguments)
# ----------------------------------------------------------------------------
def _reference_forward(states, actions, params, attend_heads):
    A, B, S = states.shape
    H = params["key_w"].shape[0]
    D = H // attend_heads
    eps = 1e-5
    hp = jax.lax.Precision.HIGHEST
    leaky = lambda x: jnp.where(x >= 0, x, 0.01 * x)

    sa_encodings, s_encodings = [], []
    for i in range(A):
        inp = jnp.concatenate([states[i], actions[i]], axis=1)
        inp = (inp - params["bn_sa_mean"][i]) / jnp.sqrt(params["bn_sa_var"][i] + eps)
        sa_encodings.append(leaky(jnp.dot(inp, params["enc_w"][i], precision=hp)
                                  + params["enc_b"][i]))
        st = (states[i] - params["bn_s_mean"][i]) / jnp.sqrt(params["bn_s_var"][i] + eps)
        s_encodings.append(leaky(jnp.dot(st, params["senc_w"][i], precision=hp)
                                 + params["senc_b"][i]))

    qs = []
    for i in range(A):
        others = []
        for h in range(attend_heads):
            lo = h * D
            sel = jnp.dot(s_encodings[i], params["sel_w"][:, lo:lo + D], precision=hp)
            keys = [jnp.dot(sa_encodings[j], params["key_w"][:, lo:lo + D], precision=hp)
                    for j in range(A) if j != i]
            vals = [leaky(jnp.dot(sa_encodings[j], params["val_w"][:, lo:lo + D], precision=hp)
                          + params["val_b"][:, lo:lo + D]) for j in range(A) if j != i]
            logits = jnp.stack([jnp.sum(sel * k, axis=-1) for k in keys], axis=-1)
            w = jax.nn.softmax(logits / jnp.sqrt(float(D)), axis=-1)
            other = sum(w[:, t:t + 1] * vals[t] for t in range(len(vals)))
            others.append(other)
        critic_in = jnp.concatenate([s_encodings[i]] + others, axis=1)
        h1 = leaky(jnp.dot(critic_in, params["c_w1"][i], precision=hp) + params["c_b1"][i])
        all_q = jnp.dot(h1, params["c_w2"][i], precision=hp) + params["c_b2"][i]
        idx = jnp.argmax(actions[i], axis=1)
        qs.append(jnp.take_along_axis(all_q, idx[:, None], axis=1))
    return qs


if __name__ == "__main__":
    NAGENTS = 3       # sa_sizes = [(16, 5)] * 3
    SDIM = 16
    ADIM = 5
    HIDDEN = 32
    HEADS = 1
    B = 8

    key = jax.random.PRNGKey(0)
    kp, ks, ka = jax.random.split(key, 3)
    params = init_params(kp, NAGENTS, SDIM, ADIM, HIDDEN, HEADS)
    states = jax.random.normal(ks, (NAGENTS, B, SDIM), jnp.float32)
    act_idx = jax.random.randint(ka, (NAGENTS, B), 0, ADIM)
    actions = jax.nn.one_hot(act_idx, ADIM, dtype=jnp.float32)

    q_list = attention_critic_forward(states, actions, params, attend_heads=HEADS)
    jax.block_until_ready(q_list)

    q_ref = _reference_forward(states, actions, params, HEADS)
    for qk, qr in zip(q_list, q_ref):
        assert qk.shape == (B, 1)
        np.testing.assert_allclose(np.asarray(qk), np.asarray(qr), rtol=2e-2, atol=2e-2)
    print("KERNEL_OK")
</pallas_src>

<mosaic_0001>
module attributes {stable_mosaic.version = 11 : i64} {
  func.func @_attention_critic_kernel(%arg0: memref<24x22xf32, #tpu.memory_space<vmem>>, %arg1: memref<3x22x64xf32, #tpu.memory_space<vmem>>, %arg2: memref<32x96xf32, #tpu.memory_space<vmem>>, %arg3: memref<3x64x32xf32, #tpu.memory_space<vmem>>, %arg4: memref<3x32x5xf32, #tpu.memory_space<vmem>>, %arg5: memref<7x32xf32, #tpu.memory_space<vmem>>, %arg6: memref<3x8xf32, #tpu.memory_space<vmem>>) attributes {dimension_semantics = [], scalar_prefetch = 0 : i64, scratch_operands = 0 : i64, tpu.core_type = #tpu.core_type<tc>} {
    %c0 = arith.constant 0 : index
    %c0_0 = arith.constant 0 : index
    %0 = vector.load %arg0[%c0, %c0_0] : memref<24x22xf32, #tpu.memory_space<vmem>>, vector<24x22xf32>
    %c0_1 = arith.constant 0 : index
    %c0_2 = arith.constant 0 : index
    %1 = vector.load %arg2[%c0_1, %c0_2] : memref<32x96xf32, #tpu.memory_space<vmem>>, vector<32x96xf32>
    %c0_3 = arith.constant 0 : index
    %c0_4 = arith.constant 0 : index
    %2 = vector.load %arg5[%c0_3, %c0_4] : memref<7x32xf32, #tpu.memory_space<vmem>>, vector<1x32xf32>
    %3 = vector.extract_strided_slice %0 {offsets = [0, 0], sizes = [8, 22], strides = [1, 1]} : vector<24x22xf32> to vector<8x22xf32>
    %c0_5 = arith.constant 0 : index
    %c0_6 = arith.constant 0 : index
    %c0_7 = arith.constant 0 : index
    %4 = vector.load %arg1[%c0_5, %c0_6, %c0_7] : memref<3x22x64xf32, #tpu.memory_space<vmem>>, vector<1x22x64xf32>
    %5 = vector.shape_cast %4 : vector<1x22x64xf32> to vector<22x64xf32>
    %cst = arith.constant dense<0.000000e+00> : vector<8x64xf32>
    %6 = tpu.matmul %3, %5, %cst {dimension_numbers = #tpu.dot_dimension_numbers<[1], [0], [0], [1], [0, 0, 1, 1], [], []>} : vector<8x22xf32>, vector<22x64xf32>, vector<8x64xf32> -> vector<8x64xf32>
    %cst_8 = arith.constant 0.000000e+00 : f32
    %7 = vector.broadcast %cst_8 : f32 to vector<8x64xf32>
    %8 = arith.cmpf oge, %6, %7 : vector<8x64xf32>
    %cst_9 = arith.constant 0.00999999977 : f32
    %9 = vector.broadcast %cst_9 : f32 to vector<8x64xf32>
    %10 = arith.mulf %9, %6 : vector<8x64xf32>
    %11 = arith.select %8, %6, %10 : vector<8x64xi1>, vector<8x64xf32>
    %12 = vector.extract_strided_slice %11 {offsets = [0, 0], sizes = [8, 32], strides = [1, 1]} : vector<8x64xf32> to vector<8x32xf32>
    %13 = vector.extract_strided_slice %11 {offsets = [0, 32], sizes = [8, 32], strides = [1, 1]} : vector<8x64xf32> to vector<8x32xf32>
    %14 = vector.extract_strided_slice %0 {offsets = [8, 0], sizes = [8, 22], strides = [1, 1]} : vector<24x22xf32> to vector<8x22xf32>
    %c1 = arith.constant 1 : index
    %c0_10 = arith.constant 0 : index
    %c0_11 = arith.constant 0 : index
    %15 = vector.load %arg1[%c1, %c0_10, %c0_11] : memref<3x22x64xf32, #tpu.memory_space<vmem>>, vector<1x22x64xf32>
    %16 = vector.shape_cast %15 : vector<1x22x64xf32> to vector<22x64xf32>
    %cst_12 = arith.constant dense<0.000000e+00> : vector<8x64xf32>
    %17 = tpu.matmul %14, %16, %cst_12 {dimension_numbers = #tpu.dot_dimension_numbers<[1], [0], [0], [1], [0, 0, 1, 1], [], []>} : vector<8x22xf32>, vector<22x64xf32>, vector<8x64xf32> -> vector<8x64xf32>
    %cst_13 = arith.constant 0.000000e+00 : f32
    %18 = vector.broadcast %cst_13 : f32 to vector<8x64xf32>
    %19 = arith.cmpf oge, %17, %18 : vector<8x64xf32>
    %cst_14 = arith.constant 0.00999999977 : f32
    %20 = vector.broadcast %cst_14 : f32 to vector<8x64xf32>
    %21 = arith.mulf %20, %17 : vector<8x64xf32>
    %22 = arith.select %19, %17, %21 : vector<8x64xi1>, vector<8x64xf32>
    %23 = vector.extract_strided_slice %22 {offsets = [0, 0], sizes = [8, 32], strides = [1, 1]} : vector<8x64xf32> to vector<8x32xf32>
    %24 = vector.extract_strided_slice %22 {offsets = [0, 32], sizes = [8, 32], strides = [1, 1]} : vector<8x64xf32> to vector<8x32xf32>
    %25 = vector.extract_strided_slice %0 {offsets = [16, 0], sizes = [8, 22], strides = [1, 1]} : vector<24x22xf32> to vector<8x22xf32>
    %c2 = arith.constant 2 : index
    %c0_15 = arith.constant 0 : index
    %c0_16 = arith.constant 0 : index
    %26 = vector.load %arg1[%c2, %c0_15, %c0_16] : memref<3x22x64xf32, #tpu.memory_space<vmem>>, vector<1x22x64xf32>
    %27 = vector.shape_cast %26 : vector<1x22x64xf32> to vector<22x64xf32>
    %cst_17 = arith.constant dense<0.000000e+00> : vector<8x64xf32>
    %28 = tpu.matmul %25, %27, %cst_17 {dimension_numbers = #tpu.dot_dimension_numbers<[1], [0], [0], [1], [0, 0, 1, 1], [], []>} : vector<8x22xf32>, vector<22x64xf32>, vector<8x64xf32> -> vector<8x64xf32>
    %cst_18 = arith.constant 0.000000e+00 : f32
    %29 = vector.broadcast %cst_18 : f32 to vector<8x64xf32>
    %30 = arith.cmpf oge, %28, %29 : vector<8x64xf32>
    %cst_19 = arith.constant 0.00999999977 : f32
    %31 = vector.broadcast %cst_19 : f32 to vector<8x64xf32>
    %32 = arith.mulf %31, %28 : vector<8x64xf32>
    %33 = arith.select %30, %28, %32 : vector<8x64xi1>, vector<8x64xf32>
    %34 = vector.extract_strided_slice %33 {offsets = [0, 0], sizes = [8, 32], strides = [1, 1]} : vector<8x64xf32> to vector<8x32xf32>
    %35 = vector.extract_strided_slice %33 {offsets = [0, 32], sizes = [8, 32], strides = [1, 1]} : vector<8x64xf32> to vector<8x32xf32>
    %36 = tpu.concatenate %12, %23, %34 in 0 : vector<8x32xf32>, vector<8x32xf32>, vector<8x32xf32> -> vector<24x32xf32>
    %37 = tpu.concatenate %13, %24, %35 in 0 : vector<8x32xf32>, vector<8x32xf32>, vector<8x32xf32> -> vector<24x32xf32>
    %38 = vector.extract_strided_slice %1 {offsets = [0, 0], sizes = [32, 64], strides = [1, 1]} : vector<32x96xf32> to vector<32x64xf32>
    %cst_20 = arith.constant dense<0.000000e+00> : vector<24x64xf32>
    %39 = tpu.matmul %36, %38, %cst_20 {dimension_numbers = #tpu.dot_dimension_numbers<[1], [0], [0], [1], [0, 0, 1, 1], [], []>} : vector<24x32xf32>, vector<32x64xf32>, vector<24x64xf32> -> vector<24x64xf32>
    %40 = vector.extract_strided_slice %39 {offsets = [0, 0], sizes = [24, 32], strides = [1, 1]} : vector<24x64xf32> to vector<24x32xf32>
    %41 = vector.extract_strided_slice %39 {offsets = [0, 32], sizes = [24, 32], strides = [1, 1]} : vector<24x64xf32> to vector<24x32xf32>
    %42 = vector.broadcast %2 : vector<1x32xf32> to vector<24x32xf32>
    %43 = arith.addf %41, %42 : vector<24x32xf32>
    %cst_21 = arith.constant 0.000000e+00 : f32
    %44 = vector.broadcast %cst_21 : f32 to vector<24x32xf32>
    %45 = arith.cmpf oge, %43, %44 : vector<24x32xf32>
    %cst_22 = arith.constant 0.00999999977 : f32
    %46 = vector.broadcast %cst_22 : f32 to vector<24x32xf32>
    %47 = arith.mulf %46, %43 : vector<24x32xf32>
    %48 = arith.select %45, %43, %47 : vector<24x32xi1>, vector<24x32xf32>
    %49 = vector.extract_strided_slice %1 {offsets = [0, 64], sizes = [32, 32], strides = [1, 1]} : vector<32x96xf32> to vector<32x32xf32>
    %cst_23 = arith.constant dense<0.000000e+00> : vector<24x32xf32>
    %50 = tpu.matmul %37, %49, %cst_23 {dimension_numbers = #tpu.dot_dimension_numbers<[1], [0], [0], [1], [0, 0, 1, 1], [], []>} : vector<24x32xf32>, vector<32x32xf32>, vector<24x32xf32> -> vector<24x32xf32>
    %51 = tpu.iota {dimensions = array<i32: 1>} : vector<8x5xi32>
    %52 = vector.extract_strided_slice %50 {offsets = [0, 0], sizes = [8, 32], strides = [1, 1]} : vector<24x32xf32> to vector<8x32xf32>
    %53 = vector.extract_strided_slice %40 {offsets = [8, 0], sizes = [8, 32], strides = [1, 1]} : vector<24x32xf32> to vector<8x32xf32>
    %54 = arith.mulf %52, %53 : vector<8x32xf32>
    %cst_24 = arith.constant dense<0.000000e+00> : vector<8xf32>
    %55 = vector.multi_reduction <add>, %54, %cst_24 [1] : vector<8x32xf32> to vector<8xf32>
    %56 = vector.shape_cast %55 : vector<8xf32> to vector<8x1xf32>
    %cst_25 = arith.constant 0.176776692 : f32
    %57 = vector.broadcast %cst_25 : f32 to vector<8x1xf32>
    %58 = arith.mulf %57, %56 : vector<8x1xf32>
    %59 = vector.extract_strided_slice %40 {offsets = [16, 0], sizes = [8, 32], strides = [1, 1]} : vector<24x32xf32> to vector<8x32xf32>
    %60 = arith.mulf %52, %59 : vector<8x32xf32>
    %cst_26 = arith.constant dense<0.000000e+00> : vector<8xf32>
    %61 = vector.multi_reduction <add>, %60, %cst_26 [1] : vector<8x32xf32> to vector<8xf32>
    %62 = vector.shape_cast %61 : vector<8xf32> to vector<8x1xf32>
    %cst_27 = arith.constant 0.176776692 : f32
    %63 = vector.broadcast %cst_27 : f32 to vector<8x1xf32>
    %64 = arith.mulf %63, %62 : vector<8x1xf32>
    %65 = arith.maximumf %58, %64 : vector<8x1xf32>
    %66 = arith.subf %58, %65 : vector<8x1xf32>
    %67 = math.exp %66 : vector<8x1xf32>
    %68 = arith.subf %64, %65 : vector<8x1xf32>
    %69 = math.exp %68 : vector<8x1xf32>
    %70 = arith.addf %67, %69 : vector<8x1xf32>
    %71 = tpu.reciprocal %70 {approx = true} : vector<8x1xf32> -> vector<8x1xf32>
    %72 = vector.extract_strided_slice %48 {offsets = [8, 0], sizes = [8, 32], strides = [1, 1]} : vector<24x32xf32> to vector<8x32xf32>
    %73 = vector.broadcast %67 : vector<8x1xf32> to vector<8x32xf32>
    %74 = arith.mulf %73, %72 : vector<8x32xf32>
    %75 = vector.extract_strided_slice %48 {offsets = [16, 0], sizes = [8, 32], strides = [1, 1]} : vector<24x32xf32> to vector<8x32xf32>
    %76 = vector.broadcast %69 : vector<8x1xf32> to vector<8x32xf32>
    %77 = arith.mulf %76, %75 : vector<8x32xf32>
    %78 = arith.addf %74, %77 : vector<8x32xf32>
    %79 = vector.broadcast %71 : vector<8x1xf32> to vector<8x32xf32>
    %80 = arith.mulf %78, %79 : vector<8x32xf32>
    %c0_28 = arith.constant 0 : index
    %c0_29 = arith.constant 0 : index
    %c0_30 = arith.constant 0 : index
    %81 = vector.load %arg3[%c0_28, %c0_29, %c0_30] : memref<3x64x32xf32, #tpu.memory_space<vmem>>, vector<1x64x32xf32>
    %82 = vector.shape_cast %81 : vector<1x64x32xf32> to vector<64x32xf32>
    %83 = vector.extract_strided_slice %37 {offsets = [0, 0], sizes = [8, 32], strides = [1, 1]} : vector<24x32xf32> to vector<8x32xf32>
    %84 = vector.extract_strided_slice %82 {offsets = [0, 0], sizes = [32, 32], strides = [1, 1]} : vector<64x32xf32> to vector<32x32xf32>
    %cst_31 = arith.constant dense<0.000000e+00> : vector<8x32xf32>
    %85 = tpu.matmul %83, %84, %cst_31 {dimension_numbers = #tpu.dot_dimension_numbers<[1], [0], [0], [1], [0, 0, 1, 1], [], []>} : vector<8x32xf32>, vector<32x32xf32>, vector<8x32xf32> -> vector<8x32xf32>
    %86 = vector.extract_strided_slice %82 {offsets = [32, 0], sizes = [32, 32], strides = [1, 1]} : vector<64x32xf32> to vector<32x32xf32>
    %cst_32 = arith.constant dense<0.000000e+00> : vector<8x32xf32>
    %87 = tpu.matmul %80, %86, %cst_32 {dimension_numbers = #tpu.dot_dimension_numbers<[1], [0], [0], [1], [0, 0, 1, 1], [], []>} : vector<8x32xf32>, vector<32x32xf32>, vector<8x32xf32> -> vector<8x32xf32>
    %88 = arith.addf %85, %87 : vector<8x32xf32>
    %c1_33 = arith.constant 1 : index
    %c0_34 = arith.constant 0 : index
    %89 = vector.load %arg5[%c1_33, %c0_34] : memref<7x32xf32, #tpu.memory_space<vmem>>, vector<1x32xf32>
    %90 = vector.broadcast %89 : vector<1x32xf32> to vector<8x32xf32>
    %91 = arith.addf %88, %90 : vector<8x32xf32>
    %cst_35 = arith.constant 0.000000e+00 : f32
    %92 = vector.broadcast %cst_35 : f32 to vector<8x32xf32>
    %93 = arith.cmpf oge, %91, %92 : vector<8x32xf32>
    %cst_36 = arith.constant 0.00999999977 : f32
    %94 = vector.broadcast %cst_36 : f32 to vector<8x32xf32>
    %95 = arith.mulf %94, %91 : vector<8x32xf32>
    %96 = arith.select %93, %91, %95 : vector<8x32xi1>, vector<8x32xf32>
    %c0_37 = arith.constant 0 : index
    %c0_38 = arith.constant 0 : index
    %c0_39 = arith.constant 0 : index
    %97 = vector.load %arg4[%c0_37, %c0_38, %c0_39] : memref<3x32x5xf32, #tpu.memory_space<vmem>>, vector<1x32x5xf32>
    %98 = vector.shape_cast %97 : vector<1x32x5xf32> to vector<32x5xf32>
    %cst_40 = arith.constant dense<0.000000e+00> : vector<8x5xf32>
    %99 = tpu.matmul %96, %98, %cst_40 {dimension_numbers = #tpu.dot_dimension_numbers<[1], [0], [0], [1], [0, 0, 1, 1], [], []>} : vector<8x32xf32>, vector<32x5xf32>, vector<8x5xf32> -> vector<8x5xf32>
    %c4 = arith.constant 4 : index
    %c0_41 = arith.constant 0 : index
    %100 = vector.load %arg5[%c4, %c0_41] : memref<7x32xf32, #tpu.memory_space<vmem>>, vector<1x5xf32>
    %101 = vector.broadcast %100 : vector<1x5xf32> to vector<8x5xf32>
    %102 = arith.addf %99, %101 : vector<8x5xf32>
    %103 = vector.extract_strided_slice %0 {offsets = [0, 16], sizes = [8, 5], strides = [1, 1]} : vector<24x22xf32> to vector<8x5xf32>
    %cst_42 = arith.constant dense<0xFF800000> : vector<8xf32>
    %104 = vector.multi_reduction <maximumf>, %103, %cst_42 [1] : vector<8x5xf32> to vector<8xf32>
    %105 = vector.shape_cast %104 : vector<8xf32> to vector<8x1xf32>
    %106 = vector.broadcast %105 : vector<8x1xf32> to vector<8x5xf32>
    %107 = arith.cmpf oeq, %103, %106 : vector<8x5xf32>
    %c5_i32 = arith.constant 5 : i32
    %108 = vector.broadcast %c5_i32 : i32 to vector<8x5xi32>
    %109 = arith.select %107, %51, %108 : vector<8x5xi1>, vector<8x5xi32>
    %cst_43 = arith.constant dense<2147483647> : vector<8xi32>
    %110 = vector.multi_reduction <minsi>, %109, %cst_43 [1] : vector<8x5xi32> to vector<8xi32>
    %111 = vector.shape_cast %110 : vector<8xi32> to vector<8x1xi32>
    %112 = vector.broadcast %111 : vector<8x1xi32> to vector<8x5xi32>
    %113 = arith.cmpi eq, %51, %112 : vector<8x5xi32>
    %cst_44 = arith.constant 1.000000e+00 : f32
    %cst_45 = arith.constant 0.000000e+00 : f32
    %114 = vector.broadcast %cst_44 : f32 to vector<8x5xf32>
    %115 = vector.broadcast %cst_45 : f32 to vector<8x5xf32>
    %116 = arith.select %113, %114, %115 : vector<8x5xi1>, vector<8x5xf32>
    %117 = arith.mulf %102, %116 : vector<8x5xf32>
    %cst_46 = arith.constant dense<0.000000e+00> : vector<8xf32>
    %118 = vector.multi_reduction <add>, %117, %cst_46 [1] : vector<8x5xf32> to vector<8xf32>
    %119 = vector.extract_strided_slice %50 {offsets = [8, 0], sizes = [8, 32], strides = [1, 1]} : vector<24x32xf32> to vector<8x32xf32>
    %120 = vector.extract_strided_slice %40 {offsets = [0, 0], sizes = [8, 32], strides = [1, 1]} : vector<24x32xf32> to vector<8x32xf32>
    %121 = arith.mulf %119, %120 : vector<8x32xf32>
    %cst_47 = arith.constant dense<0.000000e+00> : vector<8xf32>
    %122 = vector.multi_reduction <add>, %121, %cst_47 [1] : vector<8x32xf32> to vector<8xf32>
    %123 = vector.shape_cast %122 : vector<8xf32> to vector<8x1xf32>
    %cst_48 = arith.constant 0.176776692 : f32
    %124 = vector.broadcast %cst_48 : f32 to vector<8x1xf32>
    %125 = arith.mulf %124, %123 : vector<8x1xf32>
    %126 = vector.extract_strided_slice %40 {offsets = [16, 0], sizes = [8, 32], strides = [1, 1]} : vector<24x32xf32> to vector<8x32xf32>
    %127 = arith.mulf %119, %126 : vector<8x32xf32>
    %cst_49 = arith.constant dense<0.000000e+00> : vector<8xf32>
    %128 = vector.multi_reduction <add>, %127, %cst_49 [1] : vector<8x32xf32> to vector<8xf32>
    %129 = vector.shape_cast %128 : vector<8xf32> to vector<8x1xf32>
    %cst_50 = arith.constant 0.176776692 : f32
    %130 = vector.broadcast %cst_50 : f32 to vector<8x1xf32>
    %131 = arith.mulf %130, %129 : vector<8x1xf32>
    %132 = arith.maximumf %125, %131 : vector<8x1xf32>
    %133 = arith.subf %125, %132 : vector<8x1xf32>
    %134 = math.exp %133 : vector<8x1xf32>
    %135 = arith.subf %131, %132 : vector<8x1xf32>
    %136 = math.exp %135 : vector<8x1xf32>
    %137 = arith.addf %134, %136 : vector<8x1xf32>
    %138 = tpu.reciprocal %137 {approx = true} : vector<8x1xf32> -> vector<8x1xf32>
    %139 = vector.extract_strided_slice %48 {offsets = [0, 0], sizes = [8, 32], strides = [1, 1]} : vector<24x32xf32> to vector<8x32xf32>
    %140 = vector.broadcast %134 : vector<8x1xf32> to vector<8x32xf32>
    %141 = arith.mulf %140, %139 : vector<8x32xf32>
    %142 = vector.extract_strided_slice %48 {offsets = [16, 0], sizes = [8, 32], strides = [1, 1]} : vector<24x32xf32> to vector<8x32xf32>
    %143 = vector.broadcast %136 : vector<8x1xf32> to vector<8x32xf32>
    %144 = arith.mulf %143, %142 : vector<8x32xf32>
    %145 = arith.addf %141, %144 : vector<8x32xf32>
    %146 = vector.broadcast %138 : vector<8x1xf32> to vector<8x32xf32>
    %147 = arith.mulf %145, %146 : vector<8x32xf32>
    %c1_51 = arith.constant 1 : index
    %c0_52 = arith.constant 0 : index
    %c0_53 = arith.constant 0 : index
    %148 = vector.load %arg3[%c1_51, %c0_52, %c0_53] : memref<3x64x32xf32, #tpu.memory_space<vmem>>, vector<1x64x32xf32>
    %149 = vector.shape_cast %148 : vector<1x64x32xf32> to vector<64x32xf32>
    %150 = vector.extract_strided_slice %37 {offsets = [8, 0], sizes = [8, 32], strides = [1, 1]} : vector<24x32xf32> to vector<8x32xf32>
    %151 = vector.extract_strided_slice %149 {offsets = [0, 0], sizes = [32, 32], strides = [1, 1]} : vector<64x32xf32> to vector<32x32xf32>
    %cst_54 = arith.constant dense<0.000000e+00> : vector<8x32xf32>
    %152 = tpu.matmul %150, %151, %cst_54 {dimension_numbers = #tpu.dot_dimension_numbers<[1], [0], [0], [1], [0, 0, 1, 1], [], []>} : vector<8x32xf32>, vector<32x32xf32>, vector<8x32xf32> -> vector<8x32xf32>
    %153 = vector.extract_strided_slice %149 {offsets = [32, 0], sizes = [32, 32], strides = [1, 1]} : vector<64x32xf32> to vector<32x32xf32>
    %cst_55 = arith.constant dense<0.000000e+00> : vector<8x32xf32>
    %154 = tpu.matmul %147, %153, %cst_55 {dimension_numbers = #tpu.dot_dimension_numbers<[1], [0], [0], [1], [0, 0, 1, 1], [], []>} : vector<8x32xf32>, vector<32x32xf32>, vector<8x32xf32> -> vector<8x32xf32>
    %155 = arith.addf %152, %154 : vector<8x32xf32>
    %c2_56 = arith.constant 2 : index
    %c0_57 = arith.constant 0 : index
    %156 = vector.load %arg5[%c2_56, %c0_57] : memref<7x32xf32, #tpu.memory_space<vmem>>, vector<1x32xf32>
    %157 = vector.broadcast %156 : vector<1x32xf32> to vector<8x32xf32>
    %158 = arith.addf %155, %157 : vector<8x32xf32>
    %cst_58 = arith.constant 0.000000e+00 : f32
    %159 = vector.broadcast %cst_58 : f32 to vector<8x32xf32>
    %160 = arith.cmpf oge, %158, %159 : vector<8x32xf32>
    %cst_59 = arith.constant 0.00999999977 : f32
    %161 = vector.broadcast %cst_59 : f32 to vector<8x32xf32>
    %162 = arith.mulf %161, %158 : vector<8x32xf32>
    %163 = arith.select %160, %158, %162 : vector<8x32xi1>, vector<8x32xf32>
    %c1_60 = arith.constant 1 : index
    %c0_61 = arith.constant 0 : index
    %c0_62 = arith.constant 0 : index
    %164 = vector.load %arg4[%c1_60, %c0_61, %c0_62] : memref<3x32x5xf32, #tpu.memory_space<vmem>>, vector<1x32x5xf32>
    %165 = vector.shape_cast %164 : vector<1x32x5xf32> to vector<32x5xf32>
    %cst_63 = arith.constant dense<0.000000e+00> : vector<8x5xf32>
    %166 = tpu.matmul %163, %165, %cst_63 {dimension_numbers = #tpu.dot_dimension_numbers<[1], [0], [0], [1], [0, 0, 1, 1], [], []>} : vector<8x32xf32>, vector<32x5xf32>, vector<8x5xf32> -> vector<8x5xf32>
    %c5 = arith.constant 5 : index
    %c0_64 = arith.constant 0 : index
    %167 = vector.load %arg5[%c5, %c0_64] : memref<7x32xf32, #tpu.memory_space<vmem>>, vector<1x5xf32>
    %168 = vector.broadcast %167 : vector<1x5xf32> to vector<8x5xf32>
    %169 = arith.addf %166, %168 : vector<8x5xf32>
    %170 = vector.extract_strided_slice %0 {offsets = [8, 16], sizes = [8, 5], strides = [1, 1]} : vector<24x22xf32> to vector<8x5xf32>
    %cst_65 = arith.constant dense<0xFF800000> : vector<8xf32>
    %171 = vector.multi_reduction <maximumf>, %170, %cst_65 [1] : vector<8x5xf32> to vector<8xf32>
    %172 = vector.shape_cast %171 : vector<8xf32> to vector<8x1xf32>
    %173 = vector.broadcast %172 : vector<8x1xf32> to vector<8x5xf32>
    %174 = arith.cmpf oeq, %170, %173 : vector<8x5xf32>
    %c5_i32_66 = arith.constant 5 : i32
    %175 = vector.broadcast %c5_i32_66 : i32 to vector<8x5xi32>
    %176 = arith.select %174, %51, %175 : vector<8x5xi1>, vector<8x5xi32>
    %cst_67 = arith.constant dense<2147483647> : vector<8xi32>
    %177 = vector.multi_reduction <minsi>, %176, %cst_67 [1] : vector<8x5xi32> to vector<8xi32>
    %178 = vector.shape_cast %177 : vector<8xi32> to vector<8x1xi32>
    %179 = vector.broadcast %178 : vector<8x1xi32> to vector<8x5xi32>
    %180 = arith.cmpi eq, %51, %179 : vector<8x5xi32>
    %cst_68 = arith.constant 1.000000e+00 : f32
    %cst_69 = arith.constant 0.000000e+00 : f32
    %181 = vector.broadcast %cst_68 : f32 to vector<8x5xf32>
    %182 = vector.broadcast %cst_69 : f32 to vector<8x5xf32>
    %183 = arith.select %180, %181, %182 : vector<8x5xi1>, vector<8x5xf32>
    %184 = arith.mulf %169, %183 : vector<8x5xf32>
    %cst_70 = arith.constant dense<0.000000e+00> : vector<8xf32>
    %185 = vector.multi_reduction <add>, %184, %cst_70 [1] : vector<8x5xf32> to vector<8xf32>
    %186 = vector.extract_strided_slice %50 {offsets = [16, 0], sizes = [8, 32], strides = [1, 1]} : vector<24x32xf32> to vector<8x32xf32>
    %187 = vector.extract_strided_slice %40 {offsets = [0, 0], sizes = [8, 32], strides = [1, 1]} : vector<24x32xf32> to vector<8x32xf32>
    %188 = arith.mulf %186, %187 : vector<8x32xf32>
    %cst_71 = arith.constant dense<0.000000e+00> : vector<8xf32>
    %189 = vector.multi_reduction <add>, %188, %cst_71 [1] : vector<8x32xf32> to vector<8xf32>
    %190 = vector.shape_cast %189 : vector<8xf32> to vector<8x1xf32>
    %cst_72 = arith.constant 0.176776692 : f32
    %191 = vector.broadcast %cst_72 : f32 to vector<8x1xf32>
    %192 = arith.mulf %191, %190 : vector<8x1xf32>
    %193 = vector.extract_strided_slice %40 {offsets = [8, 0], sizes = [8, 32], strides = [1, 1]} : vector<24x32xf32> to vector<8x32xf32>
    %194 = arith.mulf %186, %193 : vector<8x32xf32>
    %cst_73 = arith.constant dense<0.000000e+00> : vector<8xf32>
    %195 = vector.multi_reduction <add>, %194, %cst_73 [1] : vector<8x32xf32> to vector<8xf32>
    %196 = vector.shape_cast %195 : vector<8xf32> to vector<8x1xf32>
    %cst_74 = arith.constant 0.176776692 : f32
    %197 = vector.broadcast %cst_74 : f32 to vector<8x1xf32>
    %198 = arith.mulf %197, %196 : vector<8x1xf32>
    %199 = arith.maximumf %192, %198 : vector<8x1xf32>
    %200 = arith.subf %192, %199 : vector<8x1xf32>
    %201 = math.exp %200 : vector<8x1xf32>
    %202 = arith.subf %198, %199 : vector<8x1xf32>
    %203 = math.exp %202 : vector<8x1xf32>
    %204 = arith.addf %201, %203 : vector<8x1xf32>
    %205 = tpu.reciprocal %204 {approx = true} : vector<8x1xf32> -> vector<8x1xf32>
    %206 = vector.extract_strided_slice %48 {offsets = [0, 0], sizes = [8, 32], strides = [1, 1]} : vector<24x32xf32> to vector<8x32xf32>
    %207 = vector.broadcast %201 : vector<8x1xf32> to vector<8x32xf32>
    %208 = arith.mulf %207, %206 : vector<8x32xf32>
    %209 = vector.extract_strided_slice %48 {offsets = [8, 0], sizes = [8, 32], strides = [1, 1]} : vector<24x32xf32> to vector<8x32xf32>
    %210 = vector.broadcast %203 : vector<8x1xf32> to vector<8x32xf32>
    %211 = arith.mulf %210, %209 : vector<8x32xf32>
    %212 = arith.addf %208, %211 : vector<8x32xf32>
    %213 = vector.broadcast %205 : vector<8x1xf32> to vector<8x32xf32>
    %214 = arith.mulf %212, %213 : vector<8x32xf32>
    %c2_75 = arith.constant 2 : index
    %c0_76 = arith.constant 0 : index
    %c0_77 = arith.constant 0 : index
    %215 = vector.load %arg3[%c2_75, %c0_76, %c0_77] : memref<3x64x32xf32, #tpu.memory_space<vmem>>, vector<1x64x32xf32>
    %216 = vector.shape_cast %215 : vector<1x64x32xf32> to vector<64x32xf32>
    %217 = vector.extract_strided_slice %37 {offsets = [16, 0], sizes = [8, 32], strides = [1, 1]} : vector<24x32xf32> to vector<8x32xf32>
    %218 = vector.extract_strided_slice %216 {offsets = [0, 0], sizes = [32, 32], strides = [1, 1]} : vector<64x32xf32> to vector<32x32xf32>
    %cst_78 = arith.constant dense<0.000000e+00> : vector<8x32xf32>
    %219 = tpu.matmul %217, %218, %cst_78 {dimension_numbers = #tpu.dot_dimension_numbers<[1], [0], [0], [1], [0, 0, 1, 1], [], []>} : vector<8x32xf32>, vector<32x32xf32>, vector<8x32xf32> -> vector<8x32xf32>
    %220 = vector.extract_strided_slice %216 {offsets = [32, 0], sizes = [32, 32], strides = [1, 1]} : vector<64x32xf32> to vector<32x32xf32>
    %cst_79 = arith.constant dense<0.000000e+00> : vector<8x32xf32>
    %221 = tpu.matmul %214, %220, %cst_79 {dimension_numbers = #tpu.dot_dimension_numbers<[1], [0], [0], [1], [0, 0, 1, 1], [], []>} : vector<8x32xf32>, vector<32x32xf32>, vector<8x32xf32> -> vector<8x32xf32>
    %222 = arith.addf %219, %221 : vector<8x32xf32>
    %c3 = arith.constant 3 : index
    %c0_80 = arith.constant 0 : index
    %223 = vector.load %arg5[%c3, %c0_80] : memref<7x32xf32, #tpu.memory_space<vmem>>, vector<1x32xf32>
    %224 = vector.broadcast %223 : vector<1x32xf32> to vector<8x32xf32>
    %225 = arith.addf %222, %224 : vector<8x32xf32>
    %cst_81 = arith.constant 0.000000e+00 : f32
    %226 = vector.broadcast %cst_81 : f32 to vector<8x32xf32>
    %227 = arith.cmpf oge, %225, %226 : vector<8x32xf32>
    %cst_82 = arith.constant 0.00999999977 : f32
    %228 = vector.broadcast %cst_82 : f32 to vector<8x32xf32>
    %229 = arith.mulf %228, %225 : vector<8x32xf32>
    %230 = arith.select %227, %225, %229 : vector<8x32xi1>, vector<8x32xf32>
    %c2_83 = arith.constant 2 : index
    %c0_84 = arith.constant 0 : index
    %c0_85 = arith.constant 0 : index
    %231 = vector.load %arg4[%c2_83, %c0_84, %c0_85] : memref<3x32x5xf32, #tpu.memory_space<vmem>>, vector<1x32x5xf32>
    %232 = vector.shape_cast %231 : vector<1x32x5xf32> to vector<32x5xf32>
    %cst_86 = arith.constant dense<0.000000e+00> : vector<8x5xf32>
    %233 = tpu.matmul %230, %232, %cst_86 {dimension_numbers = #tpu.dot_dimension_numbers<[1], [0], [0], [1], [0, 0, 1, 1], [], []>} : vector<8x32xf32>, vector<32x5xf32>, vector<8x5xf32> -> vector<8x5xf32>
    %c6 = arith.constant 6 : index
    %c0_87 = arith.constant 0 : index
    %234 = vector.load %arg5[%c6, %c0_87] : memref<7x32xf32, #tpu.memory_space<vmem>>, vector<1x5xf32>
    %235 = vector.broadcast %234 : vector<1x5xf32> to vector<8x5xf32>
    %236 = arith.addf %233, %235 : vector<8x5xf32>
    %237 = vector.extract_strided_slice %0 {offsets = [16, 16], sizes = [8, 5], strides = [1, 1]} : vector<24x22xf32> to vector<8x5xf32>
    %cst_88 = arith.constant dense<0xFF800000> : vector<8xf32>
    %238 = vector.multi_reduction <maximumf>, %237, %cst_88 [1] : vector<8x5xf32> to vector<8xf32>
    %239 = vector.shape_cast %238 : vector<8xf32> to vector<8x1xf32>
    %240 = vector.broadcast %239 : vector<8x1xf32> to vector<8x5xf32>
    %241 = arith.cmpf oeq, %237, %240 : vector<8x5xf32>
    %c5_i32_89 = arith.constant 5 : i32
    %242 = vector.broadcast %c5_i32_89 : i32 to vector<8x5xi32>
    %243 = arith.select %241, %51, %242 : vector<8x5xi1>, vector<8x5xi32>
    %cst_90 = arith.constant dense<2147483647> : vector<8xi32>
    %244 = vector.multi_reduction <minsi>, %243, %cst_90 [1] : vector<8x5xi32> to vector<8xi32>
    %245 = vector.shape_cast %244 : vector<8xi32> to vector<8x1xi32>
    %246 = vector.broadcast %245 : vector<8x1xi32> to vector<8x5xi32>
    %247 = arith.cmpi eq, %51, %246 : vector<8x5xi32>
    %cst_91 = arith.constant 1.000000e+00 : f32
    %cst_92 = arith.constant 0.000000e+00 : f32
    %248 = vector.broadcast %cst_91 : f32 to vector<8x5xf32>
    %249 = vector.broadcast %cst_92 : f32 to vector<8x5xf32>
    %250 = arith.select %247, %248, %249 : vector<8x5xi1>, vector<8x5xf32>
    %251 = arith.mulf %236, %250 : vector<8x5xf32>
    %cst_93 = arith.constant dense<0.000000e+00> : vector<8xf32>
    %252 = vector.multi_reduction <add>, %251, %cst_93 [1] : vector<8x5xf32> to vector<8xf32>
    %253 = vector.shape_cast %118 : vector<8xf32> to vector<1x8xf32>
    %254 = vector.shape_cast %185 : vector<8xf32> to vector<1x8xf32>
    %255 = vector.shape_cast %252 : vector<8xf32> to vector<1x8xf32>
    %256 = tpu.concatenate %253, %254, %255 in 0 : vector<1x8xf32>, vector<1x8xf32>, vector<1x8xf32> -> vector<3x8xf32>
    %c0_94 = arith.constant 0 : index
    %c0_95 = arith.constant 0 : index
    %257 = vector.load %arg6[%c0_94, %c0_95] : memref<3x8xf32, #tpu.memory_space<vmem>>, vector<3x8xf32>
    tpu.vector_store %arg6[%c0_94, %c0_95], %256 {strides = array<i32>} : memref<3x8xf32, #tpu.memory_space<vmem>>, vector<3x8xf32>,
    return
  }
}

</mosaic_0001>

<bundles_post_ra>
// kernel: tpu_custom_call.1
= control target key start
LH: loop header
LB: loop body
LE: loop exit
PB: predicated region body
PF: predicated region fallthrough
CT: control target
= control target key end

     0   :  { %vm39_vm0 = vcmask 1045504   ;;  %v1763_v1 = vmov 0.0   ;;  %vm1764_vm1 = vmmov 0   ;;  %vm35_vm2 = vcmask 179200   ;;  %s2197_s0 = inlined_call_operand.vmem [shape: f32[24,22], index: 0, kind: input, shape index: {}]   ;;  %s2198_s1 = inlined_call_operand.vmem [shape: f32[3,22,64], index: 1, kind: input, shape index: {}]   ;;  %s2199_s2 = inlined_call_operand.vmem [shape: f32[32,96], index: 2, kind: input, shape index: {}]   ;;  %s2200_s3 = inlined_call_operand.vmem [shape: f32[3,64,32], index: 3, kind: input, shape index: {}]   ;;  %s2201_s4 = inlined_call_operand.vmem [shape: f32[3,32,5], index: 4, kind: input, shape index: {}]   ;;  %s2202_s5 = inlined_call_operand.vmem [shape: f32[7,32], index: 5, kind: input, shape index: {}]   ;;  %s2203_s6 = inlined_call_operand.hbm [shape: f32[3,8], index: 6, kind: output, shape index: {}]  }
   0x1   :  { %v34_v0 = vld [vmem:[%s2198_s1 + $0x10] sm:$0x3f]  ;;  %1556 = vmatprep.subr.mxu0 %v1763_v1  ;;  %v33_v2 = vld [vmem:[%s2198_s1 + $0x8] sm:$0xff]  ;;  %1565 = vmatprep.subr.mxu1 %v1763_v1  ;;  %v1430_v4 = vld [vmem:[%s2198_s1 + $0x20] sm:$0xff] }
   0x2   :  { %v1431_v3 = vld [vmem:[%s2198_s1 + $0x28] sm:$0x3f]  ;;  %1557 = vmatpush3.msk.msra.mxu0 %vm39_vm0, %v34_v0  ;;  %1562 = vmatprep.mubr.msk.f32.mxu0 %vm1764_vm1, %v1763_v1  ;;  %v32_v5 = vld [vmem:[%s2198_s1] sm:$0xff]  ;;  %v1429_v7 = vld [vmem:[%s2198_s1 + $0x18] sm:$0xff] }
   0x3   :  { %1558 = vmatprep.subr.mxu0 %v1763_v1  ;;  %1566 = vmatpush3.msk.msra.mxu1 %vm39_vm0, %v1431_v3  ;;  %v1830_v6 = vld [vmem:[%s2197_s0] sm:$0xff] }
   0x4   :  { %1559 = vmatpush3.msra.mxu0 %v33_v2  ;;  %1567 = vmatprep.subr.mxu1 %v1763_v1 }
   0x5   :  { %1560 = vmatprep.subr.mxu0 %v1763_v1  ;;  %1568 = vmatpush3.msra.mxu1 %v1430_v4 }
   0x6   :  { %11 = vsyncpa [#allocation3], 0  ;;  %1561 = vmatpush3.msra.mxu0 %v32_v5  ;;  %1569 = vmatprep.subr.mxu1 %v1763_v1  ;;  %v1841_v8 = vld [vmem:[%s2197_s0 + $0x8] sm:$0xff]  ;;  %v1436_v9 = vld [vmem:[%s2198_s1 + $0x40] sm:$0x3f]  ;;  %s1765_s23 = smov 64  }
   0x7   :  { %1563 = vmatmul.mubr.msk.f32.vlgmr.msra.gmra.mxu0 %vm35_vm2, %v1830_v6  ;;  %1570 = vmatpush3.msra.mxu1 %v1429_v7  ;;  %v1435_v10 = vld [vmem:[%s2198_s1 + $0x38] sm:$0xff]  ;;  %v1434_v12 = vld [vmem:[%s2198_s1 + $0x30] sm:$0xff]  ;;  %v28_v15 = vld [vmem:[%s2199_s2 + $0x8] sm:$0xff]  ;;  %vm282_vm4 = vcmask 261120   ;;  %s1767_s14 = smov 32   ;;  %vm769_vm10 = vcmask 171136  }
   0x8   :  { %1571 = vmatprep.mubr.msk.f32.mxu1 %vm1764_vm1, %v1763_v1  ;;  %1574 = vmatprep.subr.mxu0 %v1763_v1  ;;  %v30_v11 = vld [vmem:[%s2199_s2 + $0x18] sm:$0xff]  ;;  %v1869_v13 = vld [vmem:[%s2197_s0 + $0x10] sm:$0xff]  ;;  %v27_v16 = vld [vmem:[%s2199_s2] sm:$0xff]  ;;  %s1768_s13 = smov 16  }
   0x9   :  { %1572 = vmatmul.mubr.msk.f32.vlgmr.msra.gmra.mxu1 %vm35_vm2, %v1841_v8  ;;  %1575 = vmatpush3.msk.msra.mxu0 %vm39_vm0, %v1436_v9  ;;  %v29_v14 = vld [vmem:[%s2199_s2 + $0x10] sm:$0xff]  ;;  %s1766_s2 = smov 96   ;;  %v528_v49 = vld [vmem:[%s2200_s3 + $0x18] sm:$0xff]  ;;  %v526_v51 = vld [vmem:[%s2200_s3 + $0x8] sm:$0xff] }
   0xa   :  { %1576 = vmatprep.subr.mxu0 %v1763_v1  ;;  %1580 = vmatprep.mubr.msk.f32.mxu0 %vm1764_vm1, %v1763_v1  ;;  %v527_v50 = vld [vmem:[%s2200_s3 + $0x10] sm:$0xff]  ;;  %v525_v52 = vld [vmem:[%s2200_s3] sm:$0xff]  ;;  %v532_v56 = vld [vmem:[%s2200_s3 + $0x38] sm:$0xff] }
   0xb   :  { %1577 = vmatpush3.msra.mxu0 %v1435_v10  ;;  %408 = vrot.lane.b32.xlu0 %v30_v11, %s1765_s23  ;;  %v1442_v53 = vld [vmem:[%s2202_s5] ss:$0 sm:$0xff]  ;;  %v531_v57 = vld [vmem:[%s2200_s3 + $0x30] sm:$0xff]  ;;  %v530_v58 = vld [vmem:[%s2200_s3 + $0x28] sm:$0xff] }
   0xc   :  { %1578 = vmatprep.subr.mxu0 %v1763_v1  ;;  %1583 = vmatprep.subr.mxu1 %v1763_v1  ;;  %v529_v59 = vld [vmem:[%s2200_s3 + $0x20] sm:$0xff] }
   0xd   :  { %1579 = vmatpush3.msra.mxu0 %v1434_v12  ;;  %1584 = vmatpush3.msra.mxu1 %v30_v11 }
   0xe   :  { %1581 = vmatmul.mubr.msk.f32.vlgmr.msra.gmra.mxu0 %vm35_vm2, %v1869_v13  ;;  %1585 = vmatprep.subr.mxu1 %v1763_v1 }
   0xf   :  { %406 = vrot.lane.b32.xlu0 %v29_v14, %s1765_s23  ;;  %404 = vrot.lane.b32.xlu1 %v28_v15, %s1765_s23 }
  0x10   :  { %1586 = vmatpush3.msra.mxu1 %v29_v14  ;;  %1591 = vmatprep.mubr.msk.f32.mxu1 %vm1764_vm1, %v1763_v1 }
  0x11   :  { %1587 = vmatprep.subr.mxu1 %v1763_v1  ;;  %1600 = vmatprep.subr.mxu0 %v1763_v1 }
  0x12   :  { %1588 = vmatpush3.msra.mxu1 %v28_v15  ;;  %1608 = vmatprep.mubr.msk.f32.mxu0 %vm1764_vm1, %v1763_v1 }
  0x13   :  { %1589 = vmatprep.subr.mxu1 %v1763_v1  ;;  %402 = vrot.lane.b32.xlu1 %v27_v16, %s1765_s23 }
  0x14   :  { %1590 = vmatpush3.msra.mxu1 %v27_v16 }
  0x15   :  { %1617 = vmatprep.subr.mxu1 %v1763_v1 }
  0x7d   :  { %v409_v17 = vpop.permute.xlu0 %408 }
  0x7e   :  { %1601 = vmatpush3.msra.mxu0 %v409_v17 }
  0x7f   :  { %1602 = vmatprep.subr.mxu0 %v1763_v1 }
  0x81   :  { %v407_v18 = vpop.permute.xlu0 %406  ;;  %v405_v19 = vpop.permute.xlu1 %404 }
  0x82   :  { %1603 = vmatpush3.msra.mxu0 %v407_v18 }
  0x83   :  { %1604 = vmatprep.subr.mxu0 %v1763_v1 }
  0x84   :  { %1605 = vmatpush3.msra.mxu0 %v405_v19 }
  0x85   :  { %1606 = vmatprep.subr.mxu0 %v1763_v1  ;;  %v403_v20 = vpop.permute.xlu1 %402 }
  0x86   :  { %1607 = vmatpush3.msra.mxu0 %v403_v20 }
  0x87   :  { %1628 = vmatprep.subr.mxu0 %v1763_v1 }
  0xc7   :  { %v109_v21 = vpop.f32.mrf.mxu0 }
  0xc8   :  { %vm113_vm3 = vcmp.ge.f32.partialorder %v109_v21, 0.0  ;;  %v114_v22 = vmul.f32 0.01, %v109_v21 }
  0xc9   :  { %v1564_v23 = vpop.f32.mrf.mxu0  ;;  %v192_v24 = vpop.f32.mrf.mxu1 }
  0xca   :  { %vm196_vm5 = vcmp.ge.f32.partialorder %v192_v24, 0.0  ;;  %v197_v25 = vmul.f32 0.01, %v192_v24  ;;  %v115_v26 = vsel %vm113_vm3, %v109_v21, %v114_v22 }
  0xcb   :  { %392 = vrot.lane.b32.xlu0 %v115_v26, %s1766_s2  ;;  %1592 = vmatmul.mubr.msk.f32.vlgmr.msra.gmra.mxu1 %vm282_vm4, %v115_v26  ;;  %v1573_v27 = vpop.f32.mrf.mxu1 }
  0xcc   :  { %v198_v28 = vsel %vm196_vm5, %v192_v24, %v197_v25  ;;  %1594 = vmatprep.mubr.msk.f32.mxu1 %vm1764_vm1, %v1763_v1  ;;  %1618 = vmatpush3.msra.mxu1 %v532_v56  ;;  %vm795_vm5 = vcmask 39936  }
  0xcd   :  { %394 = vrot.lane.b32.xlu1 %v198_v28, %s1766_s2  ;;  %1619 = vmatprep.subr.mxu1 %v1763_v1 }
  0xce   :  { %v275_v29 = vpop.f32.mrf.mxu0  ;;  %1620 = vmatpush3.msra.mxu1 %v531_v57  ;;  %v1456_v57 = vld [vmem:[%s2200_s3 + $0x68] sm:$0xff] }
  0xcf   :  { %vm279_vm6 = vcmp.ge.f32.partialorder %v275_v29, 0.0  ;;  %v280_v30 = vmul.f32 0.01, %v275_v29  ;;  %1595 = vmatmul.mubr.msk.f32.gmra.mxu1 %vm282_vm4, %v198_v28  ;;  %1621 = vmatprep.subr.mxu1 %v1763_v1 }
  0xd0   :  { %1597 = vmatprep.mubr.msk.f32.mxu1 %vm1764_vm1, %v1763_v1  ;;  %v1582_v31 = vpop.f32.mrf.mxu0  ;;  %1622 = vmatpush3.msra.mxu1 %v530_v58  ;;  %v1455_v58 = vld [vmem:[%s2200_s3 + $0x60] sm:$0xff] }
  0xd1   :  { %v281_v32 = vsel %vm279_vm6, %v275_v29, %v280_v30  ;;  %1623 = vmatprep.subr.mxu1 %v1763_v1 }
  0xd2   :  { %1624 = vmatpush3.msra.mxu1 %v529_v59 }
  0xd3   :  { %1598 = vmatmul.mubr.msk.f32.gmra.mxu1 %vm282_vm4, %v281_v32  ;;  %1639 = vmatprep.subr.mxu1 %v1763_v1 }
  0xd4   :  { %1625 = vmatprep.mubr.msk.f32.mxu1 %vm1764_vm1, %v1763_v1 }
 0x13d   :  { %v1908_v33 = vpop.permute.xlu0 %392 }
 0x13e   :  { %1609 = vmatmul.mubr.msk.f32.vlgmr.msra.gmra.mxu0 %vm282_vm4, %v1908_v33 }
 0x13f   :  { %v1912_v34 = vpop.permute.xlu1 %394  ;;  %1611 = vmatprep.mubr.msk.f32.mxu0 %vm1764_vm1, %v1763_v1  ;;  %1629 = vmatpush3.msra.mxu0 %v528_v49  ;;  %v688_v49 = vld [vmem:[%s2201_s4 + $0x8] sm:$0xff] }
 0x140   :  { %1630 = vmatprep.subr.mxu0 %v1763_v1 }
 0x141   :  { %1631 = vmatpush3.msra.mxu0 %v527_v50  ;;  %v687_v50 = vld [vmem:[%s2201_s4] sm:$0xff] }
 0x142   :  { %1612 = vmatmul.mubr.msk.f32.gmra.mxu0 %vm282_vm4, %v1912_v34  ;;  %1632 = vmatprep.subr.mxu0 %v1763_v1 }
 0x143   :  { %1614 = vmatprep.mubr.msk.f32.mxu0 %vm1764_vm1, %v1763_v1  ;;  %1633 = vmatpush3.msra.mxu0 %v526_v51  ;;  %v1458_v51 = vld [vmem:[%s2200_s3 + $0x78] sm:$0xff] }
 0x144   :  { %1634 = vmatprep.subr.mxu0 %v1763_v1 }
 0x145   :  { %1635 = vmatpush3.msra.mxu0 %v525_v52 }
 0x146   :  { %1650 = vmatprep.subr.mxu0 %v1763_v1 }
 0x18b   :  { %v1920_v35 = vpop.f32.mrf.mxu1 }
 0x18d   :  { %v1593_v36 = vpop.f32.mrf.mxu1 }
 0x18f   :  { %v1922_v37 = vpop.f32.mrf.mxu1 }
 0x191   :  { %v1596_v38 = vpop.f32.mrf.mxu1 }
 0x193   :  { %v1924_v39 = vpop.f32.mrf.mxu1 }
 0x195   :  { %v1599_v40 = vpop.f32.mrf.mxu1 }
 0x1fe   :  { %v486_v41 = vpop.f32.mrf.mxu0 }
 0x1ff   :  { %v502_v42 = vmul.f32 %v486_v41, %v1922_v37  ;;  %v507_v43 = vmul.f32 %v486_v41, %v1924_v39 }
 0x200   :  { %v1610_v44 = vpop.f32.mrf.mxu0 }
 0x201   :  { %v508_v45 = vsel %vm282_vm4, %v507_v43, 0.0  ;;  %v503_v46 = vsel %vm282_vm4, %v502_v42, 0.0 }
 0x202   :  { %509 = vadd.xlane.f32.xlu1 %v508_v45  ;;  %504 = vadd.xlane.f32.xlu0 %v503_v46  ;;  %v1930_v47 = vpop.f32.mrf.mxu0 }
 0x203   :  { %v799_v54 = vmul.f32 %v1930_v47, %v1920_v35  ;;  %v804_v25 = vmul.f32 %v1930_v47, %v1924_v39 }
 0x204   :  { %v1613_v48 = vpop.f32.mrf.mxu0 }
 0x205   :  { %v800_v55 = vsel %vm282_vm4, %v799_v54, 0.0  ;;  %v805_v26 = vsel %vm282_vm4, %v804_v25, 0.0  ;;  %v689_v48 = vld [vmem:[%s2201_s4 + $0x10] sm:$0xff] }
 0x206   :  { %v1457_v54 = vld [vmem:[%s2200_s3 + $0x70] sm:$0xff] }
 0x213   :  { %396 = vrot.lane.b32.xlu1 %v281_v32, %s1766_s2 }
 0x218   :  { %377 = vrot.lane.b32.xlu0 %v1442_v53, %s1767_s14 }
 0x237   :  { %801 = vadd.xlane.f32.xlu1 %v800_v55 }
 0x28b   :  { %v510_v60 = vpop.xlane.xlu1 %509  ;;  %v505_v61 = vpop.xlane.xlu0 %504 }
 0x28c   :  { %v511_v62 = vmul.f32 0.17677669, %v510_v60  ;;  %v506_v63 = vmul.f32 0.17677669, %v505_v61 }
 0x28e   :  { %v512_v0 = vmax.f32 %v506_v63, %v511_v62 }
 0x28f   :  { %v1971_v2 = vpop.permute.xlu1 %396  ;;  %v1981_v10 = vpop.permute.xlu0 %377 }
 0x290   :  { %v513_v3 = vsub.f32 %v506_v63, %v512_v0  ;;  %v516_v4 = vsub.f32 %v511_v62, %v512_v0  ;;  %1615 = vmatmul.mubr.msk.f32.gmra.mxu0 %vm282_vm4, %v1971_v2  ;;  %v381_v14 = vadd.f32 %v1981_v10, %v1922_v37  ;;  %v382_v15 = vadd.f32 %v1981_v10, %v1924_v39 }
 0x291   :  { %1636 = vmatprep.mubr.msk.f32.mxu0 %vm1764_vm1, %v1763_v1  ;;  %v380_v56 = vadd.f32 %v1981_v10, %v1920_v35 }
 0x292   :  { %v514_v5 = vmul.f32 1.442695, %v513_v3  ;;  %v517_v7 = vmul.f32 1.442695, %v516_v4  ;;  %v387_v16 = vmul.f32 0.01, %v381_v14 }
 0x293   :  { %v388_v17 = vmul.f32 0.01, %v382_v15  ;;  %vm384_vm7 = vcmp.ge.f32.partialorder %v381_v14, 0.0  ;;  %vm385_vm8 = vcmp.ge.f32.partialorder %v382_v15, 0.0  ;;  %v386_v59 = vmul.f32 0.01, %v380_v56 }
 0x294   :  { %1723 = vpow2.f32 %v514_v5  ;;  %1637 = vmatmul.mubr.msk.f32.vlgmr.msra.gmra.mxu0 %vm282_vm4, %v1908_v33  ;;  %v1987_v18 = vsel %vm384_vm7, %v381_v14, %v387_v16  ;;  %vm383_vm9 = vcmp.ge.f32.partialorder %v380_v56, 0.0  ;;  %v770_v3 = vsel %vm769_vm10, %v1830_v6, -inf }
 0x295   :  { %1725 = vpow2.f32 %v517_v7  ;;  %1658 = vmatprep.mubr.msk.f32.mxu0 %vm1764_vm1, %v1763_v1  ;;  %v1989_v19 = vsel %vm385_vm8, %v382_v15, %v388_v17  ;;  %1651 = vmatpush3.msra.mxu0 %v1458_v51  ;;  %v1363_v4 = vsel %vm769_vm10, %v1869_v13, -inf  ;;  %v500_v5 = vlaneseq }
 0x296   :  { %1652 = vmatprep.subr.mxu0 %v1763_v1  ;;  %vm1407_vm8 = vcmask 1040384  }
 0x297   :  { %1653 = vmatpush3.msra.mxu0 %v1457_v54  ;;  %v2050_v7 = vand.u32 127, %v500_v5  ;;  %v1462_v54 = vld [vmem:[%s2201_s4 + $0x20] sm:$0xff] }
 0x298   :  { %1654 = vmatprep.subr.mxu0 %v1763_v1 }
 0x299   :  { %1655 = vmatpush3.msra.mxu0 %v1456_v57 }
 0x29a   :  { %1656 = vmatprep.subr.mxu0 %v1763_v1 }
 0x29b   :  { %1657 = vmatpush3.msra.mxu0 %v1455_v58 }
 0x29c   :  { %1672 = vmatprep.subr.mxu0 %v1763_v1 }
 0x2a1   :  { %v1724_v9 = vpop.eup %1723 }
 0x2a2   :  { %v1726_v11 = vpop.eup %1725  ;;  %v521_v20 = vmul.f32 %v1724_v9, %v1987_v18 }
 0x2a3   :  { %v519_v12 = vadd.f32 %v1726_v11, %v1724_v9  ;;  %v522_v21 = vmul.f32 %v1726_v11, %v1989_v19 }
 0x2a5   :  { %1727 = vrcp.f32 %v519_v12  ;;  %v523_v22 = vadd.f32 %v522_v21, %v521_v20  ;;  %v1448_v21 = vld [vmem:[%s2202_s5 + $0x1] ss:$0 sm:$0xff] }
 0x2b2   :  { %v1728_v23 = vpop.eup %1727 }
 0x2b3   :  { %v524_v24 = vmul.f32 %v1728_v23, %v523_v22 }
 0x2b5   :  { %534 = vrot.lane.b32.xlu0 %v524_v24, %s1766_s2 }
 0x2c0   :  { %v802_v39 = vpop.xlane.xlu1 %801 }
 0x2c1   :  { %v803_v41 = vmul.f32 0.17677669, %v802_v39 }
 0x2d4   :  { %806 = vadd.xlane.f32.xlu0 %v805_v26  ;;  %v1454_v26 = vld [vmem:[%s2200_s3 + $0x58] sm:$0xff] }
 0x327   :  { %v535_v27 = vpop.permute.xlu0 %534 }
 0x328   :  { %1626 = vmatmul.mubr.msk.f32.vlgmr.msra.gmra.mxu1 %vm282_vm4, %v535_v27 }
 0x329   :  { %1647 = vmatprep.mubr.msk.f32.mxu1 %vm1764_vm1, %v1763_v1 }
 0x350   :  { %v496_v28 = vpop.f32.mrf.mxu0 }
 0x351   :  { %v1094_v29 = vmul.f32 %v496_v28, %v1920_v35  ;;  %v1099_v31 = vmul.f32 %v496_v28, %v1922_v37  ;;  %v690_v37 = vld [vmem:[%s2201_s4 + $0x18] sm:$0xff]  ;;  %v2040_v35 = vsel %vm383_vm9, %v380_v56, %v386_v59  ;;  %v1453_v28 = vld [vmem:[%s2200_s3 + $0x50] sm:$0xff]  ;;  %vm1409_vm9 = vcmask 1041408  }
 0x352   :  { %v1616_v30 = vpop.f32.mrf.mxu0  ;;  %1640 = vmatpush3.msra.mxu1 %v690_v37 }
 0x353   :  { %v1095_v32 = vsel %vm282_vm4, %v1094_v29, 0.0  ;;  %v1100_v38 = vsel %vm282_vm4, %v1099_v31, 0.0  ;;  %1641 = vmatprep.subr.mxu1 %v1763_v1  ;;  %v1452_v29 = vld [vmem:[%s2200_s3 + $0x48] sm:$0xff]  ;;  %v1451_v30 = vld [vmem:[%s2200_s3 + $0x40] sm:$0xff]  ;;  %v1475_v31 = vld [vmem:[%s2200_s3 + $0xb8] sm:$0xff] }
 0x354   :  { %1096 = vadd.xlane.f32.xlu1 %v1095_v32  ;;  %v2003_v33 = vpop.f32.mrf.mxu0  ;;  %1642 = vmatpush3.msra.mxu1 %v689_v48 }
 0x355   :  { %1643 = vmatprep.subr.mxu1 %v1763_v1 }
 0x356   :  { %v1638_v36 = vpop.f32.mrf.mxu0  ;;  %1644 = vmatpush3.msra.mxu1 %v688_v49 }
 0x357   :  { %1645 = vmatprep.subr.mxu1 %v1763_v1  ;;  %v1474_v36 = vld [vmem:[%s2200_s3 + $0xb0] sm:$0xff] }
 0x358   :  { %1101 = vadd.xlane.f32.xlu1 %v1100_v38  ;;  %1646 = vmatpush3.msra.mxu1 %v687_v50 }
 0x359   :  { %1661 = vmatprep.subr.mxu1 %v1763_v1 }
 0x35d   :  { %v807_v40 = vpop.xlane.xlu0 %806 }
 0x35e   :  { %v808_v42 = vmul.f32 0.17677669, %v807_v40  ;;  %v1472_v40 = vld [vmem:[%s2200_s3 + $0xa0] sm:$0xff] }
 0x360   :  { %v809_v43 = vmax.f32 %v803_v41, %v808_v42 }
 0x362   :  { %v810_v44 = vsub.f32 %v803_v41, %v809_v43  ;;  %v813_v45 = vsub.f32 %v808_v42, %v809_v43 }
 0x364   :  { %v811_v46 = vmul.f32 1.442695, %v810_v44  ;;  %v814_v47 = vmul.f32 1.442695, %v813_v45 }
 0x366   :  { %1729 = vpow2.f32 %v811_v46  ;;  %v1068_v46 = vsel %vm769_vm10, %v1841_v8, -inf }
 0x367   :  { %1731 = vpow2.f32 %v814_v47 }
 0x373   :  { %v1730_v52 = vpop.eup %1729 }
 0x374   :  { %v1732_v53 = vpop.eup %1731  ;;  %v818_v60 = vmul.f32 %v1730_v52, %v2040_v35 }
 0x375   :  { %v816_v55 = vadd.f32 %v1732_v53, %v1730_v52  ;;  %v819_v61 = vmul.f32 %v1732_v53, %v1989_v19  ;;  %v1464_v52 = vld [vmem:[%s2201_s4 + $0x30] sm:$0xff] }
 0x377   :  { %1733 = vrcp.f32 %v816_v55  ;;  %v820_v62 = vadd.f32 %v819_v61, %v818_v60 }
 0x384   :  { %v1734_v63 = vpop.eup %1733 }
 0x385   :  { %v821_v0 = vmul.f32 %v1734_v63, %v820_v62  ;;  %v1461_v63 = vld [vmem:[%s2202_s5 + $0x2] ss:$0 sm:$0xff] }
 0x387   :  { %832 = vrot.lane.b32.xlu0 %v821_v0, %s1766_s2 }
 0x3a6   :  { %771 = vmax.xlane.f32.xlu0 %v770_v3 }
 0x3aa   :  { %1364 = vmax.xlane.f32.xlu0 %v1363_v4 }
 0x3c0   :  { %774 = vrot.lane.b32.xlu0 %v2050_v7, %s1768_s13 }
 0x3dd   :  { %v1097_v9 = vpop.xlane.xlu1 %1096 }
 0x3de   :  { %v1098_v11 = vmul.f32 0.17677669, %v1097_v9 }
 0x3e1   :  { %v1102_v10 = vpop.xlane.xlu1 %1101 }
 0x3e2   :  { %v1103_v12 = vmul.f32 0.17677669, %v1102_v10 }
 0x3e4   :  { %v1104_v14 = vmax.f32 %v1098_v11, %v1103_v12 }
 0x3e6   :  { %v1105_v15 = vsub.f32 %v1098_v11, %v1104_v14  ;;  %v1108_v16 = vsub.f32 %v1103_v12, %v1104_v14 }
 0x3e8   :  { %v1106_v17 = vmul.f32 1.442695, %v1105_v15  ;;  %v1109_v19 = vmul.f32 1.442695, %v1108_v16  ;;  %v604_v20 = vpop.f32.mrf.mxu1 }
 0x3e9   :  { %v675_v22 = vadd.f32 %v2003_v33, %v604_v20  ;;  %v1469_v20 = vld [vmem:[%s2200_s3 + $0x88] sm:$0xff] }
 0x3ea   :  { %1735 = vpow2.f32 %v1106_v17  ;;  %v1627_v23 = vpop.f32.mrf.mxu1 }
 0x3eb   :  { %1737 = vpow2.f32 %v1109_v19  ;;  %v683_v24 = vadd.f32 %v1448_v21, %v675_v22  ;;  %v1470_v19 = vld [vmem:[%s2200_s3 + $0x90] sm:$0xff]  ;;  %v1468_v22 = vld [vmem:[%s2200_s3 + $0x80] sm:$0xff] }
 0x3ed   :  { %vm684_vm11 = vcmp.ge.f32.partialorder %v683_v24, 0.0  ;;  %v685_v25 = vmul.f32 0.01, %v683_v24 }
 0x3ef   :  { %v686_v27 = vsel %vm684_vm11, %v683_v24, %v685_v25  ;;  %v1482_v25 = vld [vmem:[%s2201_s4 + $0x58] sm:$0xff] }
 0x3f0   :  { %1648 = vmatmul.mubr.msk.f32.vlgmr.msra.gmra.mxu1 %vm282_vm4, %v686_v27  ;;  %v1480_v27 = vld [vmem:[%s2201_s4 + $0x48] sm:$0xff] }
 0x3f1   :  { %1662 = vmatpush3.msra.mxu1 %v1454_v26  ;;  %1669 = vmatprep.mubr.msk.f32.mxu1 %vm1764_vm1, %v1763_v1  ;;  %v1481_v26 = vld [vmem:[%s2201_s4 + $0x50] sm:$0xff] }
 0x3f2   :  { %1663 = vmatprep.subr.mxu1 %v1763_v1 }
 0x3f3   :  { %1664 = vmatpush3.msra.mxu1 %v1453_v28 }
 0x3f4   :  { %1665 = vmatprep.subr.mxu1 %v1763_v1 }
 0x3f5   :  { %1666 = vmatpush3.msra.mxu1 %v1452_v29 }
 0x3f6   :  { %1667 = vmatprep.subr.mxu1 %v1763_v1 }
 0x3f7   :  { %v1736_v32 = vpop.eup %1735  ;;  %1668 = vmatpush3.msra.mxu1 %v1451_v30 }
 0x3f8   :  { %v1738_v33 = vpop.eup %1737  ;;  %1670 = vmatmul.mubr.msk.f32.vlgmr.msra.gmra.mxu1 %vm282_vm4, %v1912_v34  ;;  %1683 = vmatprep.subr.mxu1 %v1763_v1  ;;  %v1473_v34 = vld [vmem:[%s2200_s3 + $0xa8] sm:$0xff]  ;;  %v1113_v41 = vmul.f32 %v1736_v32, %v2040_v35 }
 0x3f9   :  { %v1111_v38 = vadd.f32 %v1738_v33, %v1736_v32  ;;  %v833_v39 = vpop.permute.xlu0 %832  ;;  %1684 = vmatpush3.msra.mxu1 %v1475_v31  ;;  %1691 = vmatprep.mubr.msk.f32.mxu1 %vm1764_vm1, %v1763_v1  ;;  %v1114_v42 = vmul.f32 %v1738_v33, %v1987_v18  ;;  %v1465_v18 = vld [vmem:[%s2201_s4 + $0x38] sm:$0xff] }
 0x3fa   :  { %1659 = vmatmul.mubr.msk.f32.vlgmr.msra.gmra.mxu0 %vm282_vm4, %v833_v39  ;;  %1685 = vmatprep.subr.mxu1 %v1763_v1 }
 0x3fb   :  { %1739 = vrcp.f32 %v1111_v38  ;;  %1686 = vmatpush3.msra.mxu1 %v1474_v36  ;;  %1680 = vmatprep.mubr.msk.f32.mxu0 %vm1764_vm1, %v1763_v1  ;;  %v1115_v43 = vadd.f32 %v1114_v42, %v1113_v41 }
 0x3fc   :  { %1687 = vmatprep.subr.mxu1 %v1763_v1  ;;  %1673 = vmatpush3.msra.mxu0 %v1465_v18 }
 0x3fd   :  { %1688 = vmatpush3.msra.mxu1 %v1473_v34  ;;  %1674 = vmatprep.subr.mxu0 %v1763_v1 }
 0x3fe   :  { %1689 = vmatprep.subr.mxu1 %v1763_v1  ;;  %1675 = vmatpush3.msra.mxu0 %v1464_v52 }
 0x3ff   :  { %1690 = vmatpush3.msra.mxu1 %v1472_v40  ;;  %1676 = vmatprep.subr.mxu0 %v1763_v1 }
 0x400   :  { %1705 = vmatprep.subr.mxu1 %v1763_v1 }
 0x408   :  { %v1740_v44 = vpop.eup %1739 }
 0x409   :  { %v1116_v45 = vmul.f32 %v1740_v44, %v1115_v43  ;;  %v1449_v44 = vld [vmem:[%s2202_s5 + $0x4] ss:$0 sm:$0xff] }
 0x40b   :  { %1127 = vrot.lane.b32.xlu1 %v1116_v45, %s1766_s2 }
 0x42f   :  { %v772_v47 = vpop.xlane.xlu0 %771  ;;  %1069 = vmax.xlane.f32.xlu1 %v1068_v46 }
 0x430   :  { %vm773_vm12 = vcmp.eq.f32.partialorder %v1830_v6, %v772_v47  ;;  %v1463_v6 = vld [vmem:[%s2201_s4 + $0x28] sm:$0xff] }
 0x431   :  { %1677 = vmatpush3.msra.mxu0 %v1463_v6 }
 0x432   :  { %1678 = vmatprep.subr.mxu0 %v1763_v1 }
 0x433   :  { %v1365_v37 = vpop.xlane.xlu0 %1364  ;;  %1679 = vmatpush3.msra.mxu0 %v1462_v54 }
 0x434   :  { %1694 = vmatprep.subr.mxu0 %v1763_v1  ;;  %vm1366_vm13 = vcmp.eq.f32.partialorder %v1869_v13, %v1365_v37 }
 0x437   :  { %v775_v48 = vpop.permute.xlu0 %774 }
 0x438   :  { %v776_v49 = vsel %vm773_vm12, %v775_v48, 5  ;;  %v1367_v58 = vsel %vm1366_vm13, %v775_v48, 5 }
 0x439   :  { %v777_v50 = vsel %vm769_vm10, %v776_v49, 2147483647  ;;  %v1368_v60 = vsel %vm769_vm10, %v1367_v58, 2147483647 }
 0x43a   :  { %v779_v51 = vshra.s32 %v777_v50, 16  ;;  %v1370_v13 = vshra.s32 %v1368_v60, 16  ;;  %v778_v17 = vand.u32 65535, %v777_v50  ;;  %v1369_v33 = vand.u32 65535, %v1368_v60 }
 0x43c   :  { %v781_v53 = vcvt.s32.f32 %v779_v51  ;;  %v1372_v15 = vcvt.s32.f32 %v1370_v13  ;;  %v780_v21 = vcvt.s32.f32 %v778_v17  ;;  %v1371_v39 = vcvt.s32.f32 %v1369_v33  ;;  %v1478_v51 = vld [vmem:[%s2202_s5 + $0x3] ss:$0 sm:$0xff] }
 0x43e   :  { %782 = vmin.xlane.f32.xlu1 %v781_v53 }
 0x47d   :  { %v1128_v55 = vpop.permute.xlu1 %1127 }
 0x47e   :  { %1692 = vmatmul.mubr.msk.f32.vlgmr.msra.gmra.mxu1 %vm282_vm4, %v1128_v55 }
 0x47f   :  { %1713 = vmatprep.mubr.msk.f32.mxu1 %vm1764_vm1, %v1763_v1  ;;  %1706 = vmatpush3.msra.mxu1 %v1482_v25 }
 0x480   :  { %1707 = vmatprep.subr.mxu1 %v1763_v1 }
 0x481   :  { %1708 = vmatpush3.msra.mxu1 %v1481_v26 }
 0x482   :  { %1709 = vmatprep.subr.mxu1 %v1763_v1 }
 0x483   :  { %1710 = vmatpush3.msra.mxu1 %v1480_v27 }
 0x484   :  { %1711 = vmatprep.subr.mxu1 %v1763_v1 }
 0x4b0   :  { %v2125_v56 = vpop.f32.mrf.mxu1 }
 0x4b1   :  { %v766_v46 = vadd.f32 %v1449_v44, %v2125_v56 }
 0x4b2   :  { %v1649_v57 = vpop.f32.mrf.mxu1 }
 0x4b8   :  { %v972_v59 = vpop.f32.mrf.mxu1  ;;  %v1070_v35 = vpop.xlane.xlu1 %1069 }
 0x4b9   :  { %vm1071_vm14 = vcmp.eq.f32.partialorder %v1841_v8, %v1070_v35  ;;  %v1471_v8 = vld [vmem:[%s2200_s3 + $0x98] sm:$0xff]  ;;  %v1466_v35 = vld [vmem:[%s2202_s5 + $0x5] ss:$0 sm:$0xff] }
 0x4ba   :  { %v1072_v61 = vsel %vm1071_vm14, %v775_v48, 5  ;;  %v902_v62 = vpop.f32.mrf.mxu0  ;;  %v1671_v0 = vpop.f32.mrf.mxu1 }
 0x4bb   :  { %v1073_v3 = vsel %vm769_vm10, %v1072_v61, 2147483647  ;;  %v973_v4 = vadd.f32 %v972_v59, %v902_v62  ;;  %vm1411_vm10 = vcmask 59392  }
 0x4bc   :  { %v1660_v9 = vpop.f32.mrf.mxu0  ;;  %v1075_v10 = vshra.s32 %v1073_v3, 16  ;;  %v1074_v30 = vand.u32 65535, %v1073_v3 }
 0x4bd   :  { %v981_v11 = vadd.f32 %v1461_v63, %v973_v4 }
 0x4be   :  { %v1077_v12 = vcvt.s32.f32 %v1075_v10  ;;  %v1076_v32 = vcvt.s32.f32 %v1074_v30 }
 0x4bf   :  { %vm982_vm15 = vcmp.ge.f32.partialorder %v981_v11, 0.0  ;;  %v983_v14 = vmul.f32 0.01, %v981_v11 }
 0x4c0   :  { %1078 = vmin.xlane.f32.xlu1 %v1077_v12 }
 0x4c1   :  { %v984_v16 = vsel %vm982_vm15, %v981_v11, %v983_v14  ;;  %v1483_v11 = vld [vmem:[%s2202_s5 + $0x6] ss:$0 sm:$0xff]  ;;  %s1769_s5 = smov [#allocation2]  }
 0x4c2   :  { %1681 = vmatmul.mubr.msk.f32.vlgmr.msra.gmra.mxu0 %vm282_vm4, %v984_v16  ;;  %s1419_s10 = sshll.u32 %s1769_s5, 4  ;;  %s1420_s10 = int_to_ptr.vmem [resolvable:$true] %s1419_s10 }
 0x4c3   :  { %1695 = vmatpush3.msra.mxu0 %v1471_v8  ;;  %1702 = vmatprep.mubr.msk.f32.mxu0 %vm1764_vm1, %v1763_v1  ;;  %s1741_s11 = scalar_lea.vmem %s1420_s10, 64  ;;  %p1746_p1 = scmp.lt.s32.totalorder %s1420_s10, %s1420_s10 }
 0x4c4   :  { %1696 = vmatprep.subr.mxu0 %v1763_v1  ;;  %1373 = vmin.xlane.f32.xlu1 %v1372_v15  ;;  %p1742_p0 = scmp.ne.s32.totalorder %s1420_s10, %s1741_s11  ;;  %p1747_p2 = scmp.lt.s32.totalorder %s1741_s11, %s1741_s11 }
 0x4c5   :  { %1697 = vmatpush3.msra.mxu0 %v1470_v19 }
 0x4c6   :  { %1698 = vmatprep.subr.mxu0 %v1763_v1  ;;  %p1748_p3 = por %p1747_p2, %p1746_p1 }
 0x4c7   :  { %1699 = vmatpush3.msra.mxu0 %v1469_v20  ;;  %v783_v23 = vpop.xlane.xlu1 %782  ;;  %v1391_v20 = vshrl.u32 %v500_v5, 7 }
 0x4c8   :  { %1700 = vmatprep.subr.mxu0 %v1763_v1  ;;  %vm784_vm0 = vcmp.eq.f32.partialorder %v781_v53, %v783_v23  ;;  %v789_v34 = vcvt.f32.s32 %v783_v23  ;;  %p1749_p4 = pnand %p1748_p3, %p1742_p0 }
 0x4c9   :  { %1701 = vmatpush3.msra.mxu0 %v1468_v22  ;;  %v785_v24 = vsel %vm784_vm0, %v780_v21, inf  ;;  %v1392_v22 = vsub.s32 %v2050_v7, %v1391_v20 }
 0x4ca   :  { %1703 = vmatmul.mubr.msk.f32.vlgmr.msra.gmra.mxu0 %vm282_vm4, %v1971_v2  ;;  %786 = vmin.xlane.f32.xlu1 %v785_v24  ;;  %v1479_v2 = vld [vmem:[%s2201_s4 + $0x40] sm:$0xff]  ;;  %v790_v41 = vshll.u32 %v789_v34, 16 }
 0x4cb   :  { %1712 = vmatpush3.msra.mxu1 %v1479_v2 }
 0x53e   :  { %v1197_v28 = vpop.f32.mrf.mxu1 }
 0x540   :  { %v1693_v29 = vpop.f32.mrf.mxu1 }
 0x549   :  { %v1079_v31 = vpop.xlane.xlu1 %1078 }
 0x54a   :  { %vm1080_vm1 = vcmp.eq.f32.partialorder %v1077_v12, %v1079_v31  ;;  %v1085_v56 = vcvt.f32.s32 %v1079_v31 }
 0x54b   :  { %v1081_v36 = vsel %vm1080_vm1, %v1076_v32, inf }
 0x54c   :  { %1082 = vmin.xlane.f32.xlu1 %v1081_v36  ;;  %v1086_v58 = vshll.u32 %v1085_v56, 16 }
 0x54d   :  { %v1374_v38 = vpop.xlane.xlu1 %1373 }
 0x54e   :  { %vm1375_vm2 = vcmp.eq.f32.partialorder %v1372_v15, %v1374_v38  ;;  %v1380_v4 = vcvt.f32.s32 %v1374_v38 }
 0x54f   :  { %v1376_v40 = vsel %vm1375_vm2, %v1371_v39, inf }
 0x550   :  { %1377 = vmin.xlane.f32.xlu0 %v1376_v40  ;;  %v1381_v10 = vshll.u32 %v1380_v4, 16 }
 0x553   :  { %v787_v42 = vpop.xlane.xlu1 %786 }
 0x554   :  { %v788_v43 = vcvt.f32.s32 %v787_v42 }
 0x556   :  { %v791_v45 = vadd.s32 %v790_v41, %v788_v43 }
 0x558   :  { %vm792_vm3 = vcmp.eq.s32.totalorder %v2050_v7, %v791_v45 }
 0x559   :  { %v793_v47 = vsel %vm792_vm3, 1.0, %v1763_v1 }
 0x55a   :  { %v794_v37 = vmul.f32 %v793_v47, %v766_v46 }
 0x55c   :  { %v796_v48 = vsel %vm795_vm5, %v794_v37, 0.0 }
 0x55d   :  { %797 = vadd.xlane.f32.xlu1 %v796_v48 }
 0x582   :  { %v1064_v49 = vpop.f32.mrf.mxu0 }
 0x583   :  { %v1065_v61 = vadd.f32 %v1466_v35, %v1064_v49 }
 0x584   :  { %v1682_v50 = vpop.f32.mrf.mxu0 }
 0x58a   :  { %v1267_v18 = vpop.f32.mrf.mxu0 }
 0x58b   :  { %v1268_v52 = vadd.f32 %v1267_v18, %v1197_v28 }
 0x58c   :  { %v1704_v53 = vpop.f32.mrf.mxu0 }
 0x58d   :  { %v1276_v6 = vadd.f32 %v1478_v51, %v1268_v52 }
 0x58f   :  { %vm1277_vm6 = vcmp.ge.f32.partialorder %v1276_v6, 0.0  ;;  %v1278_v54 = vmul.f32 0.01, %v1276_v6 }
 0x591   :  { %v1279_v55 = vsel %vm1277_vm6, %v1276_v6, %v1278_v54 }
 0x592   :  { %1714 = vmatmul.mubr.msk.f32.vlgmr.msra.gmra.mxu1 %vm282_vm4, %v1279_v55 }
 0x5d5   :  { %v1083_v57 = vpop.xlane.xlu1 %1082 }
 0x5d6   :  { %v1084_v59 = vcvt.f32.s32 %v1083_v57 }
 0x5d8   :  { %v1087_v60 = vadd.s32 %v1086_v58, %v1084_v59 }
 0x5d9   :  { %v1378_v3 = vpop.xlane.xlu0 %1377 }
 0x5da   :  { %vm1088_vm7 = vcmp.eq.s32.totalorder %v2050_v7, %v1087_v60  ;;  %v1379_v9 = vcvt.f32.s32 %v1378_v3 }
 0x5db   :  { %v1089_v62 = vsel %vm1088_vm7, 1.0, %v1763_v1 }
 0x5dc   :  { %v1090_v63 = vmul.f32 %v1089_v62, %v1065_v61  ;;  %v1382_v13 = vadd.s32 %v1381_v10, %v1379_v9 }
 0x5de   :  { %v1091_v0 = vsel %vm795_vm5, %v1090_v63, 0.0  ;;  %vm1383_vm4 = vcmp.eq.s32.totalorder %v2050_v7, %v1382_v13 }
 0x5df   :  { %1092 = vadd.xlane.f32.xlu1 %v1091_v0  ;;  %v1384_v15 = vsel %vm1383_vm4, 1.0, %v1763_v1 }
 0x5e6   :  { %v798_v19 = vpop.xlane.xlu1 %797 }
 0x5e7   :  { %v1393_v24 = vrot.slane %v798_v19, %v1392_v22 }
 0x652   :  { %v1359_v12 = vpop.f32.mrf.mxu1 }
 0x653   :  { %v1360_v14 = vadd.f32 %v1483_v11, %v1359_v12 }
 0x654   :  { %v1715_v8 = vpop.f32.mrf.mxu1 }
 0x655   :  { %v1385_v16 = vmul.f32 %v1384_v15, %v1360_v14 }
 0x657   :  { %v1386_v17 = vsel %vm795_vm5, %v1385_v16, 0.0 }
 0x658   :  { %1387 = vadd.xlane.f32.xlu1 %v1386_v17 }
 0x668   :  { %v1093_v21 = vpop.xlane.xlu1 %1092 }
 0x669   :  { %v1399_v23 = vrot.slane %v1093_v21, %v1392_v22 }
 0x66b   :  { %v1408_v1 = vsel %vm1407_vm8, %v1393_v24, %v1399_v23 }
 0x6e1   :  { %v1388_v25 = vpop.xlane.xlu1 %1387 }
 0x6e2   :  { %v1405_v26 = vrot.slane %v1388_v25, %v1392_v22 }
 0x6e4   :  { %v1410_v27 = vsel %vm1409_vm9, %v1408_v1, %v1405_v26 }
 0x6e5   :  { %1412 = vst.msk [vmem:[#allocation2] sm:$0x7] %vm1411_vm10, %v1410_v27 }
 0x6e6   :  { %1752 = shalt.err (!%p1749_p4)
}
 0x6e7   :  { %1422 = dma.vmem_to_hbm [thread:$0]  %s1420_s10, 64, %s2203_s6, [#allocation3]  }
 0x6e8   :  { %1761 = dma.done.wait [#allocation3], 64  }
 0x6e9   :  { %1762 = vsyncadd [#allocation3], 4294967232 }
 0x6ea   :  { %1426 = vsyncpa [#allocation3], 1 }

</bundles_post_ra>
